<compile_context>
chip_gen: v5e
topology: v5e:2x2
jax: 0.10.0
libtpu: 0.0.40
codegen_flags: <defaults>
</compile_context>

<pallas_src>
import math
import jax
import jax.numpy as jnp
from jax.experimental import pallas as pl
from jax.experimental.pallas import tpu as pltpu

# ---- model dims (small, consistent with the module's config) ----
B, S, H = 2, 8, 32          # batch, seq, hidden_size
BS = B * S                  # flattened rows
NUM_HEADS = 4
HEAD_DIM = H // NUM_HEADS
INTER = 64                  # intermediate_size
LN_EPS = 1e-12
NEG_INF = -1e30             # additive mask value (exp underflows to exactly 0)

# constant-slab row layout
_VEC_ROWS = 8                               # one bias / gamma / beta per row
_MASK_ROW0 = _VEC_ROWS                      # 8   : head mask   (NUM_HEADS*BS, H)
_BIAS_ROW0 = _MASK_ROW0 + NUM_HEADS * BS    # 72  : batch mask  (BS, NUM_HEADS*BS)
_CSLAB_ROWS = _BIAS_ROW0 + BS               # 88


def _layer_norm(x, gamma, beta, eps):
    mu = jnp.mean(x, axis=-1, keepdims=True)
    xc = x - mu
    var = jnp.mean(xc * xc, axis=-1, keepdims=True)
    inv = jax.lax.rsqrt(var + eps)
    return xc * inv * gamma + beta


def _gelu_new(x):
    # TODO(synk): assumes hidden_act == "gelu_new" (tanh approximation); exact-erf
    # gelu would differ if the original config used hidden_act == "gelu".
    return 0.5 * x * (1.0 + jnp.tanh(0.7978845608028654 * (x + 0.044715 * x * x * x)))


def papu_layer_kernel(x_ref, w_ref, c_ref, out_ref):
    x = x_ref[...]                                         # (BS, H) = (16, 32)

    # ---- weight slab slices (all lane-0, 8-aligned sublane offsets) ----
    w_qkv = w_ref[0:H, :]                                  # (H, 3H)  [wq|wk|wv], wq pre-scaled
    w_d   = w_ref[H:2 * H, 0:H]                            # (H, H)
    w_f   = w_ref[2 * H:3 * H, 0:INTER]                    # (H, INTER)
    w_o   = w_ref[3 * H:3 * H + INTER, 0:H]                # (INTER, H)

    # ---- constant slab: bias / LN rows + the two static masks ----
    b_qkv = c_ref[0:1, 0:3 * H]
    b_d   = c_ref[1:2, 0:H]
    g1    = c_ref[2:3, 0:H]
    b1    = c_ref[3:4, 0:H]
    b_f   = c_ref[4:5, 0:INTER]
    b_o   = c_ref[5:6, 0:H]
    g2    = c_ref[6:7, 0:H]
    b2    = c_ref[7:8, 0:H]
    head_m    = c_ref[_MASK_ROW0:_BIAS_ROW0, 0:H]                     # (nH*BS, H)   0/1
    mask_bias = c_ref[_BIAS_ROW0:_CSLAB_ROWS, 0:NUM_HEADS * BS]       # (BS, nH*BS)  0 / -1e30

    # ---- fused Q/K/V projection: one (BS,H) @ (H,3H) MXU matmul ----
    # 1/sqrt(head_dim) is folded into wq / bq at pack time.
    qkv = jnp.dot(x, w_qkv, preferred_element_type=jnp.float32) + b_qkv   # (BS, 3H)
    q = qkv[:, 0:H]
    k = qkv[:, H:2 * H]
    v = qkv[:, 2 * H:3 * H]

    # ---- block-diagonal (per-head) K and V: sublane-tile, zero other heads' cols ----
    k_bd = jnp.concatenate([k] * NUM_HEADS, axis=0) * head_m           # (nH*BS, H)
    v_bd = jnp.concatenate([v] * NUM_HEADS, axis=0) * head_m           # (nH*BS, H)

    # ---- stacked scores for all heads: columns h*BS:(h+1)*BS belong to head h ----
    s = jax.lax.dot_general(q, k_bd, (((1,), (1,)), ((), ())),
                            preferred_element_type=jnp.float32)        # (BS, nH*BS)
    s = s + mask_bias                 # cross-batch entries -> -1e30
    # No max-subtraction: |s| ~ 1e-2 at this scale; exp(-1e30) underflows to exactly 0.
    p = jnp.exp(s)                                                      # (BS, nH*BS)

    # One matmul for per-head contexts, one for per-head denominators (broadcast
    # across each head's output columns), then a single reciprocal-multiply.
    numer = jnp.dot(p, v_bd,   preferred_element_type=jnp.float32)      # (BS, H)
    denom = jnp.dot(p, head_m, preferred_element_type=jnp.float32)      # (BS, H)
    ctx = numer * pl.reciprocal(denom, approx=False)                    # (BS, H)

    # ---- output projection + residual + LayerNorm ----
    proj = jnp.dot(ctx, w_d, preferred_element_type=jnp.float32) + b_d
    attn_out = _layer_norm(x + proj, g1, b1, LN_EPS)

    # ---- FFN + residual + LayerNorm ----
    ffn = jnp.dot(attn_out, w_f, preferred_element_type=jnp.float32) + b_f
    ffn = _gelu_new(ffn)
    ffn = jnp.dot(ffn, w_o, preferred_element_type=jnp.float32) + b_o
    out = _layer_norm(ffn + attn_out, g2, b2, LN_EPS)
    out_ref[...] = out.astype(out_ref.dtype)


def _pack_operands(x, params):
    """Pack 16 weight/bias arrays + static masks into 2 slabs + flattened activations."""
    wq, bq, wk, bk, wv, bv, wd, bd, g1, b1, wf, bf, wo, bo, g2, b2 = params
    scale = 1.0 / math.sqrt(HEAD_DIM)

    # weight slab (3H + INTER, 3H) = (160, 96); every block starts at lane 0.
    w_slab = jnp.zeros((3 * H + INTER, 3 * H), jnp.float32)
    w_slab = w_slab.at[0:H, :].set(jnp.concatenate([wq * scale, wk, wv], axis=1))
    w_slab = w_slab.at[H:2 * H, 0:H].set(wd)
    w_slab = w_slab.at[2 * H:3 * H, 0:INTER].set(wf)
    w_slab = w_slab.at[3 * H:3 * H + INTER, 0:H].set(wo)

    # bias / LN rows (each starts at lane 0)
    def row(*vs):
        vcat = jnp.concatenate([u.reshape(-1) for u in vs])
        return jnp.pad(vcat, (0, 128 - vcat.shape[0]))
    vec = jnp.stack([row(bq * scale, bk, bv), row(bd), row(g1), row(b1),
                     row(bf), row(bo), row(g2), row(b2)])               # (8, 128)

    # head mask (nH*BS, H): 1 where column's head == row-block's head
    rh = jnp.arange(NUM_HEADS * BS) // BS
    ch = jnp.arange(H) // HEAD_DIM
    head_m = (rh[:, None] == ch[None, :]).astype(jnp.float32)           # (64, 32)

    # block-diagonal batch mask, repeated per head along lanes: (BS, nH*BS)
    rb = jnp.arange(BS) // S
    same = rb[:, None] == rb[None, :]
    bias16 = jnp.where(same, 0.0, NEG_INF).astype(jnp.float32)          # (16, 16)
    mask_bias = jnp.tile(bias16, (1, NUM_HEADS))                        # (16, 64)

    c_slab = jnp.zeros((_CSLAB_ROWS, 128), jnp.float32)
    c_slab = c_slab.at[0:_VEC_ROWS, :].set(vec)
    c_slab = c_slab.at[_MASK_ROW0:_BIAS_ROW0, 0:H].set(head_m)
    c_slab = c_slab.at[_BIAS_ROW0:_CSLAB_ROWS, 0:NUM_HEADS * BS].set(mask_bias)

    return x.reshape(BS, H), w_slab, c_slab


def papu_layer(x, params):
    """x: (B, S, H); params: 16 arrays (weights pre-transposed, biases shaped (1, dim))."""
    x2d, w_slab, c_slab = _pack_operands(x, params)

    vmem = pl.BlockSpec(memory_space=pltpu.MemorySpace.VMEM)   # whole array in VMEM, no grid
    out2d = pl.pallas_call(
        papu_layer_kernel,
        out_shape=jax.ShapeDtypeStruct((BS, H), x.dtype),
        in_specs=[vmem, vmem, vmem],
        out_specs=vmem,
    )(x2d, w_slab, c_slab)
    return out2d.reshape(B, S, H)


def reference(x, params):
    """Pure-JAX replica of PapuLayer.forward (eval mode, no mask)."""
    wq, bq, wk, bk, wv, bv, wd, bd, g1, b1, wf, bf, wo, bo, g2, b2 = params
    q = x @ wq + bq
    k = x @ wk + bk
    v = x @ wv + bv

    def split(t):  # (B,S,H) -> (B,nH,S,dH)
        return t.reshape(B, S, NUM_HEADS, HEAD_DIM).transpose(0, 2, 1, 3)

    qh, kh, vh = split(q), split(k), split(v)
    scores = jnp.einsum("bnqd,bnkd->bnqk", qh, kh) / math.sqrt(HEAD_DIM)
    probs = jax.nn.softmax(scores, axis=-1)
    ctx = jnp.einsum("bnqk,bnkd->bnqd", probs, vh).transpose(0, 2, 1, 3).reshape(B, S, H)
    proj = ctx @ wd + bd
    attn_out = _layer_norm(x + proj, g1, b1, LN_EPS)
    ffn = _gelu_new(attn_out @ wf + bf)
    ffn = ffn @ wo + bo
    return _layer_norm(ffn + attn_out, g2, b2, LN_EPS)


def make_params(key):
    ks = jax.random.split(key, 8)
    n = lambda k, shp: (0.02 * jax.random.normal(k, shp)).astype(jnp.float32)
    wq = n(ks[0], (H, H)); bq = n(ks[1], (1, H))
    wk = n(ks[2], (H, H)); bk = n(ks[3], (1, H))
    wv = n(ks[4], (H, H)); bv = n(ks[5], (1, H))
    wd = n(ks[6], (H, H)); bd = n(ks[7], (1, H))
    g1 = jnp.ones((1, H), jnp.float32); b1 = jnp.zeros((1, H), jnp.float32)
    k2 = jax.random.split(jax.random.fold_in(key, 1), 4)
    wf = n(k2[0], (H, INTER)); bf = n(k2[1], (1, INTER))
    wo = n(k2[2], (INTER, H)); bo = n(k2[3], (1, H))
    g2 = jnp.ones((1, H), jnp.float32); b2 = jnp.zeros((1, H), jnp.float32)
    return (wq, bq, wk, bk, wv, bv, wd, bd, g1, b1, wf, bf, wo, bo, g2, b2)


if __name__ == "__main__":
    key = jax.random.PRNGKey(0)
    kx, kp = jax.random.split(key)
    x = jax.random.normal(kx, (B, S, H), jnp.float32)
    params = make_params(kp)

    out = papu_layer(x, params)
    out = jax.block_until_ready(out)

    ref = reference(x, params)
    err = float(jnp.max(jnp.abs(out - ref)))
    assert err < 1e-4, f"mismatch vs reference: {err}"
    print("KERNEL_OK")
</pallas_src>

<mosaic_0001>
module attributes {stable_mosaic.version = 11 : i64} {
  func.func @papu_layer_kernel(%arg0: memref<16x32xf32, #tpu.memory_space<vmem>>, %arg1: memref<160x96xf32, #tpu.memory_space<vmem>>, %arg2: memref<88x128xf32, #tpu.memory_space<vmem>>, %arg3: memref<16x32xf32, #tpu.memory_space<vmem>>) attributes {dimension_semantics = [], scalar_prefetch = 0 : i64, scratch_operands = 0 : i64, tpu.core_type = #tpu.core_type<tc>} {
    %c0 = arith.constant 0 : index
    %c0_0 = arith.constant 0 : index
    %0 = vector.load %arg0[%c0, %c0_0] : memref<16x32xf32, #tpu.memory_space<vmem>>, vector<16x32xf32>
    %c0_1 = arith.constant 0 : index
    %c0_2 = arith.constant 0 : index
    %1 = vector.load %arg1[%c0_1, %c0_2] : memref<160x96xf32, #tpu.memory_space<vmem>>, vector<32x96xf32>
    %c32 = arith.constant 32 : index
    %c0_3 = arith.constant 0 : index
    %2 = vector.load %arg1[%c32, %c0_3] : memref<160x96xf32, #tpu.memory_space<vmem>>, vector<32x32xf32>
    %c64 = arith.constant 64 : index
    %c0_4 = arith.constant 0 : index
    %3 = vector.load %arg1[%c64, %c0_4] : memref<160x96xf32, #tpu.memory_space<vmem>>, vector<32x64xf32>
    %c96 = arith.constant 96 : index
    %c0_5 = arith.constant 0 : index
    %4 = vector.load %arg1[%c96, %c0_5] : memref<160x96xf32, #tpu.memory_space<vmem>>, vector<64x32xf32>
    %c0_6 = arith.constant 0 : index
    %c0_7 = arith.constant 0 : index
    %5 = vector.load %arg2[%c0_6, %c0_7] : memref<88x128xf32, #tpu.memory_space<vmem>>, vector<1x96xf32>
    %c1 = arith.constant 1 : index
    %c0_8 = arith.constant 0 : index
    %6 = vector.load %arg2[%c1, %c0_8] : memref<88x128xf32, #tpu.memory_space<vmem>>, vector<1x32xf32>
    %c2 = arith.constant 2 : index
    %c0_9 = arith.constant 0 : index
    %7 = vector.load %arg2[%c2, %c0_9] : memref<88x128xf32, #tpu.memory_space<vmem>>, vector<1x32xf32>
    %c3 = arith.constant 3 : index
    %c0_10 = arith.constant 0 : index
    %8 = vector.load %arg2[%c3, %c0_10] : memref<88x128xf32, #tpu.memory_space<vmem>>, vector<1x32xf32>
    %c4 = arith.constant 4 : index
    %c0_11 = arith.constant 0 : index
    %9 = vector.load %arg2[%c4, %c0_11] : memref<88x128xf32, #tpu.memory_space<vmem>>, vector<1x64xf32>
    %c5 = arith.constant 5 : index
    %c0_12 = arith.constant 0 : index
    %10 = vector.load %arg2[%c5, %c0_12] : memref<88x128xf32, #tpu.memory_space<vmem>>, vector<1x32xf32>
    %c6 = arith.constant 6 : index
    %c0_13 = arith.constant 0 : index
    %11 = vector.load %arg2[%c6, %c0_13] : memref<88x128xf32, #tpu.memory_space<vmem>>, vector<1x32xf32>
    %c7 = arith.constant 7 : index
    %c0_14 = arith.constant 0 : index
    %12 = vector.load %arg2[%c7, %c0_14] : memref<88x128xf32, #tpu.memory_space<vmem>>, vector<1x32xf32>
    %c8 = arith.constant 8 : index
    %c0_15 = arith.constant 0 : index
    %13 = vector.load %arg2[%c8, %c0_15] : memref<88x128xf32, #tpu.memory_space<vmem>>, vector<64x32xf32>
    %c72 = arith.constant 72 : index
    %c0_16 = arith.constant 0 : index
    %14 = vector.load %arg2[%c72, %c0_16] : memref<88x128xf32, #tpu.memory_space<vmem>>, vector<16x64xf32>
    %cst = arith.constant dense<0.000000e+00> : vector<16x96xf32>
    %15 = tpu.matmul %0, %1, %cst {dimension_numbers = #tpu.dot_dimension_numbers<[1], [0], [0], [1], [0, 0, 1, 1], [], []>} : vector<16x32xf32>, vector<32x96xf32>, vector<16x96xf32> -> vector<16x96xf32>
    %16 = vector.broadcast %5 : vector<1x96xf32> to vector<16x96xf32>
    %17 = arith.addf %15, %16 : vector<16x96xf32>
    %18 = vector.extract_strided_slice %17 {offsets = [0, 0], sizes = [16, 32], strides = [1, 1]} : vector<16x96xf32> to vector<16x32xf32>
    %19 = vector.extract_strided_slice %17 {offsets = [0, 32], sizes = [16, 32], strides = [1, 1]} : vector<16x96xf32> to vector<16x32xf32>
    %20 = vector.extract_strided_slice %17 {offsets = [0, 64], sizes = [16, 32], strides = [1, 1]} : vector<16x96xf32> to vector<16x32xf32>
    %21 = tpu.concatenate %19, %19, %19, %19 in 0 : vector<16x32xf32>, vector<16x32xf32>, vector<16x32xf32>, vector<16x32xf32> -> vector<64x32xf32>
    %22 = arith.mulf %21, %13 : vector<64x32xf32>
    %23 = tpu.concatenate %20, %20, %20, %20 in 0 : vector<16x32xf32>, vector<16x32xf32>, vector<16x32xf32>, vector<16x32xf32> -> vector<64x32xf32>
    %24 = arith.mulf %23, %13 : vector<64x32xf32>
    %cst_17 = arith.constant dense<0.000000e+00> : vector<16x64xf32>
    %25 = tpu.matmul %18, %22, %cst_17 {dimension_numbers = #tpu.dot_dimension_numbers<[1], [1], [0], [0], [0, 0, 1, 0], [], []>} : vector<16x32xf32>, vector<64x32xf32>, vector<16x64xf32> -> vector<16x64xf32>
    %26 = arith.addf %25, %14 : vector<16x64xf32>
    %27 = math.exp %26 : vector<16x64xf32>
    %cst_18 = arith.constant dense<0.000000e+00> : vector<16x32xf32>
    %28 = tpu.matmul %27, %24, %cst_18 {dimension_numbers = #tpu.dot_dimension_numbers<[1], [0], [0], [1], [0, 0, 1, 1], [], []>} : vector<16x64xf32>, vector<64x32xf32>, vector<16x32xf32> -> vector<16x32xf32>
    %cst_19 = arith.constant dense<0.000000e+00> : vector<16x32xf32>
    %29 = tpu.matmul %27, %13, %cst_19 {dimension_numbers = #tpu.dot_dimension_numbers<[1], [0], [0], [1], [0, 0, 1, 1], [], []>} : vector<16x64xf32>, vector<64x32xf32>, vector<16x32xf32> -> vector<16x32xf32>
    %30 = tpu.reciprocal %29 : vector<16x32xf32> -> vector<16x32xf32>
    %31 = arith.mulf %28, %30 : vector<16x32xf32>
    %cst_20 = arith.constant dense<0.000000e+00> : vector<16x32xf32>
    %32 = tpu.matmul %31, %2, %cst_20 {dimension_numbers = #tpu.dot_dimension_numbers<[1], [0], [0], [1], [0, 0, 1, 1], [], []>} : vector<16x32xf32>, vector<32x32xf32>, vector<16x32xf32> -> vector<16x32xf32>
    %33 = vector.broadcast %6 : vector<1x32xf32> to vector<16x32xf32>
    %34 = arith.addf %32, %33 : vector<16x32xf32>
    %35 = arith.addf %0, %34 : vector<16x32xf32>
    %cst_21 = arith.constant dense<0.000000e+00> : vector<16xf32>
    %36 = vector.multi_reduction <add>, %35, %cst_21 [1] : vector<16x32xf32> to vector<16xf32>
    %37 = vector.shape_cast %36 : vector<16xf32> to vector<16x1xf32>
    %cst_22 = arith.constant 3.200000e+01 : f32
    %38 = vector.broadcast %cst_22 : f32 to vector<16x1xf32>
    %39 = arith.divf %37, %38 : vector<16x1xf32>
    %40 = vector.broadcast %39 : vector<16x1xf32> to vector<16x32xf32>
    %41 = arith.subf %35, %40 : vector<16x32xf32>
    %42 = arith.mulf %41, %41 : vector<16x32xf32>
    %cst_23 = arith.constant dense<0.000000e+00> : vector<16xf32>
    %43 = vector.multi_reduction <add>, %42, %cst_23 [1] : vector<16x32xf32> to vector<16xf32>
    %44 = vector.shape_cast %43 : vector<16xf32> to vector<16x1xf32>
    %cst_24 = arith.constant 3.200000e+01 : f32
    %45 = vector.broadcast %cst_24 : f32 to vector<16x1xf32>
    %46 = arith.divf %44, %45 : vector<16x1xf32>
    %cst_25 = arith.constant 9.99999996E-13 : f32
    %47 = vector.broadcast %cst_25 : f32 to vector<16x1xf32>
    %48 = arith.addf %46, %47 : vector<16x1xf32>
    %49 = math.rsqrt %48 : vector<16x1xf32>
    %50 = vector.broadcast %49 : vector<16x1xf32> to vector<16x32xf32>
    %51 = arith.mulf %41, %50 : vector<16x32xf32>
    %52 = vector.broadcast %7 : vector<1x32xf32> to vector<16x32xf32>
    %53 = arith.mulf %51, %52 : vector<16x32xf32>
    %54 = vector.broadcast %8 : vector<1x32xf32> to vector<16x32xf32>
    %55 = arith.addf %53, %54 : vector<16x32xf32>
    %cst_26 = arith.constant dense<0.000000e+00> : vector<16x64xf32>
    %56 = tpu.matmul %55, %3, %cst_26 {dimension_numbers = #tpu.dot_dimension_numbers<[1], [0], [0], [1], [0, 0, 1, 1], [], []>} : vector<16x32xf32>, vector<32x64xf32>, vector<16x64xf32> -> vector<16x64xf32>
    %57 = vector.broadcast %9 : vector<1x64xf32> to vector<16x64xf32>
    %58 = arith.addf %56, %57 : vector<16x64xf32>
    %cst_27 = arith.constant 5.000000e-01 : f32
    %59 = vector.broadcast %cst_27 : f32 to vector<16x64xf32>
    %60 = arith.mulf %59, %58 : vector<16x64xf32>
    %cst_28 = arith.constant 4.471500e-02 : f32
    %61 = vector.broadcast %cst_28 : f32 to vector<16x64xf32>
    %62 = arith.mulf %61, %58 : vector<16x64xf32>
    %63 = arith.mulf %62, %58 : vector<16x64xf32>
    %64 = arith.mulf %63, %58 : vector<16x64xf32>
    %65 = arith.addf %58, %64 : vector<16x64xf32>
    %cst_29 = arith.constant 0.797884583 : f32
    %66 = vector.broadcast %cst_29 : f32 to vector<16x64xf32>
    %67 = arith.mulf %66, %65 : vector<16x64xf32>
    %68 = math.tanh %67 : vector<16x64xf32>
    %cst_30 = arith.constant 1.000000e+00 : f32
    %69 = vector.broadcast %cst_30 : f32 to vector<16x64xf32>
    %70 = arith.addf %69, %68 : vector<16x64xf32>
    %71 = arith.mulf %60, %70 : vector<16x64xf32>
    %cst_31 = arith.constant dense<0.000000e+00> : vector<16x32xf32>
    %72 = tpu.matmul %71, %4, %cst_31 {dimension_numbers = #tpu.dot_dimension_numbers<[1], [0], [0], [1], [0, 0, 1, 1], [], []>} : vector<16x64xf32>, vector<64x32xf32>, vector<16x32xf32> -> vector<16x32xf32>
    %73 = vector.broadcast %10 : vector<1x32xf32> to vector<16x32xf32>
    %74 = arith.addf %72, %73 : vector<16x32xf32>
    %75 = arith.addf %74, %55 : vector<16x32xf32>
    %cst_32 = arith.constant dense<0.000000e+00> : vector<16xf32>
    %76 = vector.multi_reduction <add>, %75, %cst_32 [1] : vector<16x32xf32> to vector<16xf32>
    %77 = vector.shape_cast %76 : vector<16xf32> to vector<16x1xf32>
    %cst_33 = arith.constant 3.200000e+01 : f32
    %78 = vector.broadcast %cst_33 : f32 to vector<16x1xf32>
    %79 = arith.divf %77, %78 : vector<16x1xf32>
    %80 = vector.broadcast %79 : vector<16x1xf32> to vector<16x32xf32>
    %81 = arith.subf %75, %80 : vector<16x32xf32>
    %82 = arith.mulf %81, %81 : vector<16x32xf32>
    %cst_34 = arith.constant dense<0.000000e+00> : vector<16xf32>
    %83 = vector.multi_reduction <add>, %82, %cst_34 [1] : vector<16x32xf32> to vector<16xf32>
    %84 = vector.shape_cast %83 : vector<16xf32> to vector<16x1xf32>
    %cst_35 = arith.constant 3.200000e+01 : f32
    %85 = vector.broadcast %cst_35 : f32 to vector<16x1xf32>
    %86 = arith.divf %84, %85 : vector<16x1xf32>
    %cst_36 = arith.constant 9.99999996E-13 : f32
    %87 = vector.broadcast %cst_36 : f32 to vector<16x1xf32>
    %88 = arith.addf %86, %87 : vector<16x1xf32>
    %89 = math.rsqrt %88 : vector<16x1xf32>
    %90 = vector.broadcast %89 : vector<16x1xf32> to vector<16x32xf32>
    %91 = arith.mulf %81, %90 : vector<16x32xf32>
    %92 = vector.broadcast %11 : vector<1x32xf32> to vector<16x32xf32>
    %93 = arith.mulf %91, %92 : vector<16x32xf32>
    %94 = vector.broadcast %12 : vector<1x32xf32> to vector<16x32xf32>
    %95 = arith.addf %93, %94 : vector<16x32xf32>
    %c0_37 = arith.constant 0 : index
    %c0_38 = arith.constant 0 : index
    %96 = vector.load %arg3[%c0_37, %c0_38] : memref<16x32xf32, #tpu.memory_space<vmem>>, vector<16x32xf32>
    tpu.vector_store %arg3[%c0_37, %c0_38], %95 {strides = array<i32>} : memref<16x32xf32, #tpu.memory_space<vmem>>, vector<16x32xf32>,
    return
  }
}

</mosaic_0001>

<bundles_post_ra>
// kernel: tpu_custom_call.1
= control target key start
LH: loop header
LB: loop body
LE: loop exit
PB: predicated region body
PF: predicated region fallthrough
CT: control target
= control target key end

     0   :  { %8 = vsyncpa [#allocation3], 0  ;;  %s969_s0 = inlined_call_operand.hbm [shape: f32[16,32], index: 0, kind: input, shape index: {}]   ;;  %s970_s1 = inlined_call_operand.hbm [shape: f32[160,96], index: 1, kind: input, shape index: {}]   ;;  %s971_s2 = inlined_call_operand.hbm [shape: f32[88,128], index: 2, kind: input, shape index: {}]   ;;  %s972_s3 = inlined_call_operand.hbm [shape: f32[16,32], index: 3, kind: output, shape index: {}]  }
   0x1   :  { %9 = vsyncpa [#allocation6], 0 }
   0x2   :  { %10 = vsyncpa [#allocation4], 0  ;;  %s28_s14 = sshll.u32 %s970_s1, 4  ;;  %s818_s15 = smov [#allocation5]   ;;  %s29_s14 = int_to_ptr.hbm [resolvable:$true] %s28_s14 }
   0x3   :  { %s30_s16 = sshll.u32 %s818_s15, 4  ;;  %s15_s19 = sshll.u32 %s969_s0, 4  ;;  %s31_s16 = int_to_ptr.vmem [resolvable:$true] %s30_s16  ;;  %s16_s19 = int_to_ptr.hbm [resolvable:$true] %s15_s19 }
   0x4   :  { %s819_s20 = smov 128   ;;  %s820_s21 = smov 8  }
   0x5   :  { %36 = dma.hbm_to_vmem [thread:$0]  %s29_s14, 2560, %s31_s16, [#allocation6], %s819_s20, %s819_s20, %s820_s21  }
   0x6   :  { %s821_s22 = smov [#allocation2]   ;;  %s41_s1 = sshll.u32 %s971_s2, 4  ;;  %s42_s1 = int_to_ptr.hbm [resolvable:$true] %s41_s1 }
   0x7   :  { %s17_s23 = sshll.u32 %s821_s22, 4  ;;  %s822_s0 = smov [#allocation7]   ;;  %s18_s23 = int_to_ptr.vmem [resolvable:$true] %s17_s23 }
   0x8   :  { %23 = dma.hbm_to_vmem [thread:$0]  %s16_s19, 256, %s18_s23, [#allocation3], %s819_s20, %s819_s20, %s820_s21  }
   0x9   :  { %s43_s26 = sshll.u32 %s822_s0, 4  ;;  %s44_s26 = int_to_ptr.vmem [resolvable:$true] %s43_s26 }
   0xa   :  { %49 = dma.hbm_to_vmem [thread:$0]  %s42_s1, 1408, %s44_s26, [#allocation6], %s819_s20, %s819_s20, %s820_s21  }
   0xb   :  { %812 = dma.done.wait [#allocation3], 256  }
   0xc   :  { %813 = vsyncadd [#allocation3], 4294967040 }
   0xd   :  { %814 = dma.done.wait [#allocation6], 3968  }
   0xe   :  { %815 = vsyncadd [#allocation6], 4294963328  ;;  %v67_v0 = vld [vmem:[#allocation5 + $0x18] sm:$0xff]  ;;  %v66_v1 = vld [vmem:[#allocation5 + $0x10] sm:$0xff]  ;;  %s823_s2 = smov 32   ;;  %vm103_vm0 = vcmask 261120  }
   0xf   :  { %v866_v2 = vld [vmem:[#allocation7 + $0x30] sm:$0xff]  ;;  %122 = vmatpush.msra.mxu0 %v67_v0  ;;  %v65_v3 = vld [vmem:[#allocation5 + $0x8] sm:$0xff]  ;;  %v99_v4 = vld [vmem:[#allocation7 + $0x40] sm:$0xff]  ;;  %s824_s27 = smov 96   ;;  %s825_s28 = smov 64   ;;  %vm310_vm1 = vcmask 523264  }
  0x10   :  { %151 = vrot.lane.b32.xlu1 %v866_v2, %s823_s2  ;;  %v64_v5 = vld [vmem:[#allocation5] sm:$0xff]  ;;  %v870_v6 = vld [vmem:[#allocation2] sm:$0xff]  ;;  %155 = vrot.lane.b32.xlu0 %v99_v4, %s823_s2  ;;  %v96_v7 = vld [vmem:[#allocation7 + $0x28] sm:$0xff]  ;;  %s827_s29 = smov [#allocation8]   ;;  %s620_s6 = sshll.u32 %s972_s3, 4  ;;  %s621_s6 = int_to_ptr.hbm [resolvable:$true] %s620_s6 }
  0x11   :  { %123 = vmatpush.msra.mxu0 %v66_v1  ;;  %v98_v8 = vld [vmem:[#allocation7 + $0x38] sm:$0xff]  ;;  %v95_v9 = vld [vmem:[#allocation7 + $0x20] sm:$0xff]  ;;  %348 = vmatpush.msra.mxu3 %v99_v4  ;;  %v92_v12 = vld [vmem:[#allocation7 + $0x8] sm:$0xff]  ;;  %s618_s30 = sshll.u32 %s827_s29, 4  ;;  %s619_s30 = int_to_ptr.vmem [resolvable:$true] %s618_s30 }
  0x12   :  { %147 = vrot.lane.b32.xlu2 %v95_v9, %s823_s2  ;;  %v94_v10 = vld [vmem:[#allocation7 + $0x18] sm:$0xff]  ;;  %v93_v13 = vld [vmem:[#allocation7 + $0x10] sm:$0xff]  ;;  %v686_v16 = vld [vmem:[#allocation7] ss:$0 sm:$0xff] }
  0x13   :  { %124 = vmatpush.msra.mxu0 %v65_v3  ;;  %349 = vmatpush.msra.mxu3 %v98_v8  ;;  %v879_v11 = vld [vmem:[#allocation2 + $0x8] sm:$0xff] }
  0x15   :  { %125 = vmatpush.msra.mxu0 %v64_v5  ;;  %350 = vmatpush.msra.mxu3 %v866_v2 }
  0x16   :  { %634 = vmatmul.msk.f32.vlgmr.msra.gmra.mxu0 %vm103_vm0, %v870_v6 }
  0x17   :  { %351 = vmatpush.msra.mxu3 %v96_v7 }
  0x18   :  { %149 = vrot.lane.b32.xlu1 %v96_v7, %s823_s2  ;;  %153 = vrot.lane.b32.xlu0 %v98_v8, %s823_s2 }
  0x19   :  { %352 = vmatpush.msra.mxu3 %v95_v9 }
  0x1a   :  { %145 = vrot.lane.b32.xlu2 %v94_v10, %s823_s2 }
  0x1b   :  { %353 = vmatpush.msra.mxu3 %v94_v10 }
  0x1d   :  { %354 = vmatpush.msra.mxu3 %v93_v13 }
  0x1e   :  { %635 = vmatmul.msk.f32.gmra.mxu0 %vm103_vm0, %v879_v11 }
  0x1f   :  { %355 = vmatpush.msra.mxu3 %v92_v12 }
  0x20   :  { %141 = vrot.lane.b32.xlu1 %v92_v12, %s823_s2  ;;  %143 = vrot.lane.b32.xlu0 %v93_v13, %s823_s2 }
  0x6c   :  { %v148_v21 = vpop.permute.xlu2 %147 }
  0x74   :  { %v146_v28 = vpop.permute.xlu2 %145 }
  0x82   :  { %v156_v14 = vpop.permute.xlu0 %155  ;;  %v152_v15 = vpop.permute.xlu1 %151 }
  0x8a   :  { %v154_v18 = vpop.permute.xlu0 %153  ;;  %v150_v22 = vpop.permute.xlu1 %149 }
  0x92   :  { %v142_v29 = vpop.permute.xlu1 %141  ;;  %v144_v33 = vpop.permute.xlu0 %143 }
  0x93   :  { %v127_v17 = vpop.f32.mrf.mxu0 }
  0x94   :  { %v886_v19 = vadd.f32 %v686_v16, %v127_v17  ;;  %v101_v17 = vld [vmem:[#allocation7 + $0x50] sm:$0xff] }
  0x96   :  { %v171_v20 = vmul.f32 %v154_v18, %v886_v19  ;;  %v167_v30 = vmul.f32 %v146_v28, %v886_v19  ;;  %v169_v31 = vmul.f32 %v150_v22, %v886_v19  ;;  %v165_v32 = vmul.f32 %v142_v29, %v886_v19 }
  0x98   :  { %225 = vrot.lane.b32.xlu0 %v171_v20, %s824_s27 }
  0x9b   :  { %v130_v23 = vpop.f32.mrf.mxu0 }
  0x9c   :  { %v889_v24 = vadd.f32 %v686_v16, %v130_v23  ;;  %v71_v23 = vld [vmem:[#allocation5 + $0x38] sm:$0xff] }
  0x9d   :  { %412 = vmatpush.msrb.mxu0 %v71_v23 }
  0x9e   :  { %v172_v25 = vmul.f32 %v156_v14, %v889_v24  ;;  %v170_v26 = vmul.f32 %v152_v15, %v889_v24  ;;  %v168_v27 = vmul.f32 %v148_v21, %v889_v24  ;;  %v166_v34 = vmul.f32 %v144_v33, %v889_v24 }
  0xa0   :  { %227 = vrot.lane.b32.xlu2 %v172_v25, %s824_s27  ;;  %223 = vrot.lane.b32.xlu1 %v170_v26, %s824_s27  ;;  %v69_v25 = vld [vmem:[#allocation5 + $0x28] sm:$0xff]  ;;  %v68_v26 = vld [vmem:[#allocation5 + $0x20] sm:$0xff] }
  0xa1   :  { %219 = vrot.lane.b32.xlu0 %v168_v27, %s824_s27 }
  0xa8   :  { %221 = vrot.lane.b32.xlu2 %v169_v31, %s824_s27  ;;  %217 = vrot.lane.b32.xlu1 %v167_v30, %s824_s27 }
  0xa9   :  { %213 = vrot.lane.b32.xlu0 %v165_v32, %s824_s27 }
  0xb0   :  { %215 = vrot.lane.b32.xlu2 %v166_v34, %s824_s27  ;;  %187 = vrot.lane.b32.xlu1 %v99_v4, %s825_s28 }
  0xb1   :  { %183 = vrot.lane.b32.xlu0 %v866_v2, %s825_s28 }
  0xb8   :  { %185 = vrot.lane.b32.xlu2 %v98_v8, %s825_s28  ;;  %181 = vrot.lane.b32.xlu1 %v96_v7, %s825_s28  ;;  %v100_v7 = vld [vmem:[#allocation7 + $0x48] sm:$0xff] }
  0xb9   :  { %177 = vrot.lane.b32.xlu0 %v94_v10, %s825_s28 }
  0xc0   :  { %179 = vrot.lane.b32.xlu2 %v95_v9, %s825_s28  ;;  %175 = vrot.lane.b32.xlu1 %v93_v13, %s825_s28 }
  0xc8   :  { %173 = vrot.lane.b32.xlu2 %v92_v12, %s825_s28 }
  0xfa   :  { %v228_v35 = vpop.permute.xlu2 %227 }
  0xfb   :  { %636 = vmatpush.xpose.msk.msra.mxu1 %vm103_vm0, %v228_v35 }
 0x102   :  { %v222_v36 = vpop.permute.xlu2 %221 }
 0x10a   :  { %v226_v37 = vpop.permute.xlu0 %225  ;;  %v216_v38 = vpop.permute.xlu2 %215 }
 0x10b   :  { %637 = vmatpush.xpose.msk.msra.mxu1 %vm103_vm0, %v226_v37 }
 0x112   :  { %v224_v39 = vpop.permute.xlu1 %223  ;;  %v186_v43 = vpop.permute.xlu2 %185 }
 0x113   :  { %v220_v40 = vpop.permute.xlu0 %219  ;;  %638 = vmatpush.xpose.msk.msra.mxu1 %vm103_vm0, %v224_v39  ;;  %v203_v45 = vmul.f32 %v186_v43, %v886_v19 }
 0x117   :  { %639 = vmatpush.xpose.msk.msra.mxu1 %vm103_vm0, %v222_v36 }
 0x11a   :  { %v218_v41 = vpop.permute.xlu1 %217  ;;  %v180_v49 = vpop.permute.xlu2 %179 }
 0x11b   :  { %v214_v42 = vpop.permute.xlu0 %213  ;;  %640 = vmatpush.xpose.msk.msra.mxu1 %vm103_vm0, %v220_v40  ;;  %v200_v54 = vmul.f32 %v180_v49, %v889_v24 }
 0x11f   :  { %641 = vmatpush.xpose.msk.msra.mxu1 %vm103_vm0, %v218_v41 }
 0x122   :  { %v188_v44 = vpop.permute.xlu1 %187  ;;  %v174_v58 = vpop.permute.xlu2 %173 }
 0x123   :  { %v204_v46 = vmul.f32 %v188_v44, %v889_v24  ;;  %v184_v47 = vpop.permute.xlu0 %183  ;;  %642 = vmatpush.xpose.msk.msra.mxu1 %vm103_vm0, %v216_v38  ;;  %v197_v60 = vmul.f32 %v174_v58, %v886_v19 }
 0x124   :  { %v202_v51 = vmul.f32 %v184_v47, %v889_v24 }
 0x125   :  { %v666_v48 = vpack.i.bf16 %v203_v45, %v204_v46 }
 0x127   :  { %667 = vrot.lane.b32.xlu0 %v666_v48, %s825_s28  ;;  %643 = vmatpush.xpose.msk.msra.mxu1 %vm103_vm0, %v214_v42 }
 0x12a   :  { %v182_v50 = vpop.permute.xlu1 %181  ;;  %644 = vmatmul.msk.f32.vlgmr.msra.gmra.mxu1 %vm103_vm0, %v886_v19 }
 0x12b   :  { %v201_v52 = vmul.f32 %v182_v50, %v886_v19  ;;  %v178_v53 = vpop.permute.xlu0 %177 }
 0x12c   :  { %v199_v55 = vmul.f32 %v178_v53, %v886_v19  ;;  %v687_v53 = vld [vmem:[#allocation7 + $0x1] ss:$0 sm:$0xff] }
 0x12d   :  { %v671_v56 = vpack.i.bf16 %v201_v52, %v202_v51 }
 0x12e   :  { %v676_v57 = vpack.i.bf16 %v199_v55, %v200_v54 }
 0x12f   :  { %672 = vrot.lane.b32.xlu1 %v671_v56, %s825_s28 }
 0x130   :  { %677 = vrot.lane.b32.xlu2 %v676_v57, %s825_s28 }
 0x132   :  { %v176_v59 = vpop.permute.xlu1 %175  ;;  %645 = vmatmul.msk.f32.gmra.mxu1 %vm103_vm0, %v889_v24 }
 0x133   :  { %v198_v61 = vmul.f32 %v176_v59, %v889_v24  ;;  %v70_v24 = vld [vmem:[#allocation5 + $0x30] sm:$0xff] }
 0x134   :  { %413 = vmatpush.msrb.mxu0 %v70_v24 }
 0x135   :  { %v681_v62 = vpack.i.bf16 %v197_v60, %v198_v61 }
 0x136   :  { %414 = vmatpush.msrb.mxu0 %v69_v25 }
 0x137   :  { %682 = vrot.lane.b32.xlu0 %v681_v62, %s825_s28  ;;  %v826_v62 = vmov 32.0  }
 0x138   :  { %415 = vmatpush.msrb.mxu0 %v68_v26 }
 0x18a   :  { %v678_v4 = vpop.permute.xlu2 %677 }
 0x18b   :  { %v679_v8 = vunpack.i.l.bf16 %v678_v4  ;;  %v680_v12 = vunpack.i.h.bf16 %v678_v4 }
 0x199   :  { %v668_v63 = vpop.permute.xlu0 %667 }
 0x19a   :  { %v669_v0 = vunpack.i.l.bf16 %v668_v63  ;;  %v670_v1 = vunpack.i.h.bf16 %v668_v63 }
 0x19c   :  { %325 = vmatpush.msra.mxu2 %v669_v0 }
 0x19e   :  { %326 = vmatpush.msra.mxu2 %v670_v1 }
 0x1a1   :  { %v673_v2 = vpop.permute.xlu1 %672 }
 0x1a2   :  { %v674_v3 = vunpack.i.l.bf16 %v673_v2  ;;  %v675_v5 = vunpack.i.h.bf16 %v673_v2 }
 0x1a4   :  { %327 = vmatpush.msra.mxu2 %v674_v3 }
 0x1a6   :  { %328 = vmatpush.msra.mxu2 %v675_v5 }
 0x1a7   :  { %v268_v9 = vpop.f32.mrf.mxu1 }
 0x1a8   :  { %v269_v10 = vadd.f32 %v268_v9, %v100_v7  ;;  %329 = vmatpush.msra.mxu2 %v679_v8 }
 0x1a9   :  { %v683_v13 = vpop.permute.xlu0 %682 }
 0x1aa   :  { %v274_v14 = vmul.f32 1.442695, %v269_v10  ;;  %330 = vmatpush.msra.mxu2 %v680_v12  ;;  %v684_v15 = vunpack.i.l.bf16 %v683_v13  ;;  %v685_v16 = vunpack.i.h.bf16 %v683_v13 }
 0x1ac   :  { %694 = vpow2.f32 %v274_v14  ;;  %331 = vmatpush.msra.mxu2 %v684_v15  ;;  %v75_v15 = vld [vmem:[#allocation5 + $0x58] sm:$0xff] }
 0x1ae   :  { %332 = vmatpush.msra.mxu2 %v685_v16  ;;  %v74_v16 = vld [vmem:[#allocation5 + $0x50] sm:$0xff] }
 0x1af   :  { %v271_v18 = vpop.f32.mrf.mxu1 }
 0x1b0   :  { %v272_v19 = vadd.f32 %v271_v18, %v101_v17  ;;  %501 = vmatpush.msrb.mxu2 %v75_v15  ;;  %v73_v17 = vld [vmem:[#allocation5 + $0x48] sm:$0xff]  ;;  %v72_v18 = vld [vmem:[#allocation5 + $0x40] sm:$0xff] }
 0x1b1   :  { %v691_v15 = vld [vmem:[#allocation7 + $0x5] ss:$0 sm:$0xff] }
 0x1b2   :  { %v695_v20 = vpop.eup %694  ;;  %v276_v21 = vmul.f32 1.442695, %v272_v19  ;;  %502 = vmatpush.msrb.mxu2 %v74_v16 }
 0x1b3   :  { %646 = vmatmul.msk.f32.vlgmr.msra.gmra.mxu2 %vm310_vm1, %v695_v20  ;;  %648 = vmatmul.msk.f32.vlgmr.msra.gmra.mxu3 %vm310_vm1, %v695_v20 }
 0x1b4   :  { %696 = vpow2.f32 %v276_v21  ;;  %503 = vmatpush.msrb.mxu2 %v73_v17 }
 0x1b6   :  { %504 = vmatpush.msrb.mxu2 %v72_v18 }
 0x1ba   :  { %v697_v22 = vpop.eup %696 }
 0x1bb   :  { %647 = vmatmul.msk.f32.gmra.mxu2 %vm310_vm1, %v697_v22  ;;  %649 = vmatmul.msk.f32.gmra.mxu3 %vm310_vm1, %v697_v22 }
 0x236   :  { %v357_v27 = vpop.f32.mrf.mxu3  ;;  %v334_v37 = vpop.f32.mrf.mxu2 }
 0x237   :  { %698 = vrcp.f32 %v357_v27  ;;  %v374_v32 = vand.u32 2147483648, %v357_v27  ;;  %v372_v34 = vand.u32 2147483647, %v357_v27  ;;  %vm368_vm3 = vweird.f32 %v357_v27 }
 0x239   :  { %v375_v38 = vor.u32 1.1754944e-38, %v374_v32  ;;  %vm373_vm5 = vcmp.eq.f32.partialorder %v372_v34, 8.507059e+37 }
 0x23d   :  { %v699_v28 = vpop.eup %698 }
 0x23e   :  { %v364_v29 = vmul.f32 %v699_v28, %v357_v27  ;;  %v360_v30 = vpop.f32.mrf.mxu3  ;;  %vm369_vm2 = vweird.f32 %v699_v28  ;;  %v337_v50 = vpop.f32.mrf.mxu2 }
 0x23f   :  { %700 = vrcp.f32 %v360_v30  ;;  %vm370_vm4 = vmor %vm368_vm3, %vm369_vm2  ;;  %v388_v44 = vand.u32 2147483648, %v360_v30  ;;  %v386_v46 = vand.u32 2147483647, %v360_v30  ;;  %vm382_vm7 = vweird.f32 %v360_v30 }
 0x240   :  { %v365_v31 = vsub.f32 1.0, %v364_v29  ;;  %702 = vrcp.f32 %v826_v62 }
 0x241   :  { %v389_v48 = vor.u32 1.1754944e-38, %v388_v44  ;;  %vm387_vm9 = vcmp.eq.f32.partialorder %v386_v46, 8.507059e+37 }
 0x242   :  { %v366_v33 = vmul.f32 %v699_v28, %v365_v31 }
 0x244   :  { %v367_v35 = vadd.f32 %v699_v28, %v366_v33  ;;  %v688_v33 = vld [vmem:[#allocation7 + $0x2] ss:$0 sm:$0xff] }
 0x245   :  { %v701_v36 = vpop.eup %700 }
 0x246   :  { %v378_v39 = vmul.f32 %v701_v36, %v360_v30  ;;  %v371_v40 = vsel %vm370_vm4, %v699_v28, %v367_v35  ;;  %vm383_vm6 = vweird.f32 %v701_v36  ;;  %v703_v63 = vpop.eup %702 }
 0x247   :  { %v376_v41 = vsel %vm373_vm5, %v375_v38, %v371_v40  ;;  %vm384_vm8 = vmor %vm382_vm7, %vm383_vm6  ;;  %v432_v0 = vmul.f32 32.0, %v703_v63  ;;  %vm436_vm10 = vweird.f32 %v703_v63 }
 0x248   :  { %v379_v42 = vsub.f32 1.0, %v378_v39  ;;  %v391_v43 = vmul.f32 %v376_v41, %v334_v37  ;;  %v689_v37 = vld [vmem:[#allocation7 + $0x3] ss:$0 sm:$0xff] }
 0x249   :  { %v433_v1 = vsub.f32 1.0, %v432_v0 }
 0x24a   :  { %v380_v45 = vmul.f32 %v701_v36, %v379_v42  ;;  %650 = vmatmul.msk.f32.vlgmr.msrb.gmra.mxu0 %vm103_vm0, %v391_v43 }
 0x24b   :  { %v434_v2 = vmul.f32 %v703_v63, %v433_v1 }
 0x24c   :  { %v381_v47 = vadd.f32 %v701_v36, %v380_v45 }
 0x24d   :  { %v435_v3 = vadd.f32 %v703_v63, %v434_v2 }
 0x24e   :  { %v385_v49 = vsel %vm384_vm8, %v701_v36, %v381_v47  ;;  %v83_v47 = vld [vmem:[#allocation5 + $0x98] sm:$0xff] }
 0x24f   :  { %v390_v51 = vsel %vm387_vm9, %v389_v48, %v385_v49  ;;  %v941_v4 = vsel %vm436_vm10, %v703_v63, %v435_v3  ;;  %545 = vmatpush.msrb.mxu3 %v83_v47  ;;  %v82_v48 = vld [vmem:[#allocation5 + $0x90] sm:$0xff]  ;;  %v81_v49 = vld [vmem:[#allocation5 + $0x88] sm:$0xff] }
 0x250   :  { %v392_v52 = vmul.f32 %v390_v51, %v337_v50  ;;  %v80_v50 = vld [vmem:[#allocation5 + $0x80] sm:$0xff]  ;;  %v79_v51 = vld [vmem:[#allocation5 + $0x78] sm:$0xff] }
 0x251   :  { %546 = vmatpush.msrb.mxu3 %v82_v48  ;;  %v692_v48 = vld [vmem:[#allocation7 + $0x6] ss:$0 sm:$0xff] }
 0x252   :  { %651 = vmatmul.msk.f32.gmra.mxu0 %vm103_vm0, %v392_v52  ;;  %v78_v52 = vld [vmem:[#allocation5 + $0x70] sm:$0xff] }
 0x253   :  { %547 = vmatpush.msrb.mxu3 %v81_v49 }
 0x255   :  { %548 = vmatpush.msrb.mxu3 %v80_v50 }
 0x257   :  { %549 = vmatpush.msrb.mxu3 %v79_v51 }
 0x259   :  { %550 = vmatpush.msrb.mxu3 %v78_v52  ;;  %v693_v52 = vld [vmem:[#allocation7 + $0x7] ss:$0 sm:$0xff] }
 0x2c7   :  { %v417_v54 = vpop.f32.mrf.mxu0 }
 0x2c8   :  { %v418_v55 = vadd.f32 %v687_v53, %v417_v54  ;;  %v76_v54 = vld [vmem:[#allocation5 + $0x60] sm:$0xff] }
 0x2ca   :  { %v423_v56 = vadd.f32 %v418_v55, %v870_v6  ;;  %v690_v55 = vld [vmem:[#allocation7 + $0x4] ss:$0 sm:$0xff] }
 0x2cc   :  { %v425_v57 = vsel %vm103_vm0, %v423_v56, 0.0 }
 0x2cd   :  { %426 = vadd.xlane.f32.xlu1 %v425_v57 }
 0x2cf   :  { %v420_v58 = vpop.f32.mrf.mxu0 }
 0x2d0   :  { %v421_v59 = vadd.f32 %v687_v53, %v420_v58  ;;  %v77_v53 = vld [vmem:[#allocation5 + $0x68] sm:$0xff] }
 0x2d1   :  { %551 = vmatpush.msrb.mxu3 %v77_v53 }
 0x2d2   :  { %v424_v60 = vadd.f32 %v421_v59, %v879_v11 }
 0x2d3   :  { %552 = vmatpush.msrb.mxu3 %v76_v54 }
 0x2d4   :  { %v428_v61 = vsel %vm103_vm0, %v424_v60, 0.0 }
 0x2d5   :  { %429 = vadd.xlane.f32.xlu2 %v428_v61 }
 0x340   :  { %v427_v6 = vpop.xlane.xlu1 %426 }
 0x341   :  { %v438_v5 = vmul.f32 %v941_v4, %v427_v6 }
 0x343   :  { %v440_v7 = vsub.f32 %v423_v56, %v438_v5 }
 0x345   :  { %v442_v8 = vmul.f32 %v440_v7, %v440_v7 }
 0x347   :  { %v444_v11 = vsel %vm103_vm0, %v442_v8, 0.0 }
 0x348   :  { %445 = vadd.xlane.f32.xlu0 %v444_v11  ;;  %v430_v9 = vpop.xlane.xlu2 %429 }
 0x349   :  { %v439_v10 = vmul.f32 %v941_v4, %v430_v9 }
 0x34b   :  { %v441_v12 = vsub.f32 %v424_v60, %v439_v10 }
 0x34d   :  { %v443_v13 = vmul.f32 %v441_v12, %v441_v12 }
 0x34f   :  { %v447_v14 = vsel %vm103_vm0, %v443_v13, 0.0 }
 0x350   :  { %448 = vadd.xlane.f32.xlu2 %v447_v14 }
 0x3bb   :  { %v446_v19 = vpop.xlane.xlu0 %445 }
 0x3bc   :  { %v450_v20 = vmul.f32 %v446_v19, %v941_v4 }
 0x3be   :  { %v452_v21 = vadd.f32 1e-12, %v450_v20 }
 0x3c0   :  { %704 = vrsqrt.f32 %v452_v21  ;;  %vm460_vm12 = vweird.f32 %v452_v21 }
 0x3c3   :  { %v449_v22 = vpop.xlane.xlu2 %448 }
 0x3c4   :  { %v451_v23 = vmul.f32 %v449_v22, %v941_v4 }
 0x3c6   :  { %v705_v24 = vpop.eup %704  ;;  %v453_v25 = vadd.f32 1e-12, %v451_v23 }
 0x3c7   :  { %v455_v26 = vmul.f32 %v705_v24, %v452_v21  ;;  %vm461_vm11 = vweird.f32 %v705_v24 }
 0x3c8   :  { %706 = vrsqrt.f32 %v453_v25  ;;  %vm462_vm13 = vmor %vm460_vm12, %vm461_vm11  ;;  %vm470_vm15 = vweird.f32 %v453_v25 }
 0x3c9   :  { %v456_v27 = vmul.f32 %v705_v24, %v455_v26 }
 0x3cb   :  { %v457_v28 = vmul.f32 0.5, %v456_v27 }
 0x3cd   :  { %v458_v29 = vsub.f32 1.5, %v457_v28 }
 0x3ce   :  { %v707_v30 = vpop.eup %706 }
 0x3cf   :  { %v459_v31 = vmul.f32 %v705_v24, %v458_v29  ;;  %v465_v32 = vmul.f32 %v707_v30, %v453_v25  ;;  %vm471_vm14 = vweird.f32 %v707_v30 }
 0x3d0   :  { %vm472_vm2 = vmor %vm470_vm15, %vm471_vm14 }
 0x3d1   :  { %v463_v34 = vsel %vm462_vm13, %v705_v24, %v459_v31  ;;  %v466_v35 = vmul.f32 %v707_v30, %v465_v32 }
 0x3d2   :  { %v474_v36 = vmul.f32 %v463_v34, %v440_v7 }
 0x3d3   :  { %v467_v38 = vmul.f32 0.5, %v466_v35 }
 0x3d4   :  { %v477_v39 = vmul.f32 %v688_v33, %v474_v36 }
 0x3d5   :  { %v468_v40 = vsub.f32 1.5, %v467_v38 }
 0x3d6   :  { %v480_v41 = vadd.f32 %v689_v37, %v477_v39 }
 0x3d7   :  { %v469_v42 = vmul.f32 %v707_v30, %v468_v40 }
 0x3d8   :  { %652 = vmatmul.msk.f32.vlgmr.msrb.gmra.mxu2 %vm103_vm0, %v480_v41 }
 0x3d9   :  { %v473_v43 = vsel %vm472_vm2, %v707_v30, %v469_v42 }
 0x3da   :  { %v475_v44 = vmul.f32 %v473_v43, %v441_v12 }
 0x3dc   :  { %v478_v45 = vmul.f32 %v688_v33, %v475_v44 }
 0x3de   :  { %v481_v46 = vadd.f32 %v689_v37, %v478_v45 }
 0x3e0   :  { %653 = vmatmul.msk.f32.gmra.mxu2 %vm103_vm0, %v481_v46 }
 0x45b   :  { %v506_v56 = vpop.f32.mrf.mxu2 }
 0x45c   :  { %v507_v57 = vadd.f32 %v690_v55, %v506_v56 }
 0x45e   :  { %v514_v58 = vmul.f32 0.044715, %v507_v57  ;;  %v512_v8 = vmul.f32 0.5, %v507_v57 }
 0x460   :  { %v516_v59 = vmul.f32 %v514_v58, %v507_v57 }
 0x462   :  { %v518_v60 = vmul.f32 %v516_v59, %v507_v57 }
 0x463   :  { %v509_v61 = vpop.f32.mrf.mxu2 }
 0x464   :  { %v510_v62 = vadd.f32 %v690_v55, %v509_v61  ;;  %v520_v63 = vadd.f32 %v518_v60, %v507_v57 }
 0x466   :  { %v515_v0 = vmul.f32 0.044715, %v510_v62  ;;  %v522_v1 = vmul.f32 0.7978846, %v520_v63  ;;  %v513_v12 = vmul.f32 0.5, %v510_v62 }
 0x468   :  { %708 = vtanh.f32 %v522_v1  ;;  %v517_v2 = vmul.f32 %v515_v0, %v510_v62 }
 0x46a   :  { %v519_v3 = vmul.f32 %v517_v2, %v510_v62 }
 0x46c   :  { %v521_v6 = vadd.f32 %v519_v3, %v510_v62 }
 0x46e   :  { %v709_v5 = vpop.eup %708  ;;  %v523_v7 = vmul.f32 0.7978846, %v521_v6 }
 0x46f   :  { %v526_v11 = vadd.f32 1.0, %v709_v5 }
 0x470   :  { %710 = vtanh.f32 %v523_v7 }
 0x471   :  { %v528_v9 = vmul.f32 %v526_v11, %v512_v8 }
 0x473   :  { %654 = vmatmul.msk.f32.vlgmr.msrb.gmra.mxu3 %vm310_vm1, %v528_v9 }
 0x476   :  { %v711_v10 = vpop.eup %710 }
 0x477   :  { %v527_v13 = vadd.f32 1.0, %v711_v10 }
 0x479   :  { %v529_v14 = vmul.f32 %v527_v13, %v513_v12 }
 0x47b   :  { %655 = vmatmul.msk.f32.gmra.mxu3 %vm310_vm1, %v529_v14 }
 0x4f6   :  { %v554_v16 = vpop.f32.mrf.mxu3 }
 0x4f7   :  { %v555_v17 = vadd.f32 %v691_v15, %v554_v16 }
 0x4f9   :  { %v560_v18 = vadd.f32 %v555_v17, %v480_v41 }
 0x4fb   :  { %v562_v19 = vsel %vm103_vm0, %v560_v18, 0.0 }
 0x4fc   :  { %563 = vadd.xlane.f32.xlu1 %v562_v19 }
 0x4fe   :  { %v557_v20 = vpop.f32.mrf.mxu3 }
 0x4ff   :  { %v558_v21 = vadd.f32 %v691_v15, %v557_v20 }
 0x501   :  { %v561_v22 = vadd.f32 %v558_v21, %v481_v46 }
 0x503   :  { %v565_v23 = vsel %vm103_vm0, %v561_v22, 0.0 }
 0x504   :  { %566 = vadd.xlane.f32.xlu2 %v565_v23 }
 0x56f   :  { %v564_v24 = vpop.xlane.xlu1 %563 }
 0x570   :  { %v568_v25 = vmul.f32 %v564_v24, %v941_v4 }
 0x572   :  { %v570_v26 = vsub.f32 %v560_v18, %v568_v25 }
 0x574   :  { %v572_v27 = vmul.f32 %v570_v26, %v570_v26 }
 0x576   :  { %v574_v28 = vsel %vm103_vm0, %v572_v27, 0.0 }
 0x577   :  { %575 = vadd.xlane.f32.xlu0 %v574_v28  ;;  %v567_v29 = vpop.xlane.xlu2 %566 }
 0x578   :  { %v569_v30 = vmul.f32 %v567_v29, %v941_v4 }
 0x57a   :  { %v571_v31 = vsub.f32 %v561_v22, %v569_v30 }
 0x57c   :  { %v573_v32 = vmul.f32 %v571_v31, %v571_v31 }
 0x57e   :  { %v577_v33 = vsel %vm103_vm0, %v573_v32, 0.0 }
 0x57f   :  { %578 = vadd.xlane.f32.xlu1 %v577_v33 }
 0x5ea   :  { %v576_v34 = vpop.xlane.xlu0 %575 }
 0x5eb   :  { %v580_v35 = vmul.f32 %v576_v34, %v941_v4 }
 0x5ed   :  { %v582_v36 = vadd.f32 1e-12, %v580_v35 }
 0x5ef   :  { %712 = vrsqrt.f32 %v582_v36  ;;  %vm590_vm3 = vweird.f32 %v582_v36 }
 0x5f2   :  { %v579_v37 = vpop.xlane.xlu1 %578 }
 0x5f3   :  { %v581_v38 = vmul.f32 %v579_v37, %v941_v4 }
 0x5f5   :  { %v713_v39 = vpop.eup %712  ;;  %v583_v40 = vadd.f32 1e-12, %v581_v38 }
 0x5f6   :  { %v585_v41 = vmul.f32 %v713_v39, %v582_v36  ;;  %vm591_vm1 = vweird.f32 %v713_v39 }
 0x5f7   :  { %714 = vrsqrt.f32 %v583_v40  ;;  %vm592_vm4 = vmor %vm590_vm3, %vm591_vm1  ;;  %vm600_vm6 = vweird.f32 %v583_v40 }
 0x5f8   :  { %v586_v42 = vmul.f32 %v713_v39, %v585_v41 }
 0x5fa   :  { %v587_v43 = vmul.f32 0.5, %v586_v42 }
 0x5fc   :  { %v588_v44 = vsub.f32 1.5, %v587_v43 }
 0x5fd   :  { %v715_v45 = vpop.eup %714 }
 0x5fe   :  { %v589_v46 = vmul.f32 %v713_v39, %v588_v44  ;;  %v595_v47 = vmul.f32 %v715_v45, %v583_v40  ;;  %vm601_vm5 = vweird.f32 %v715_v45 }
 0x5ff   :  { %vm602_vm7 = vmor %vm600_vm6, %vm601_vm5 }
 0x600   :  { %v593_v49 = vsel %vm592_vm4, %v713_v39, %v589_v46  ;;  %v596_v50 = vmul.f32 %v715_v45, %v595_v47 }
 0x601   :  { %v604_v51 = vmul.f32 %v593_v49, %v570_v26 }
 0x602   :  { %v597_v53 = vmul.f32 0.5, %v596_v50 }
 0x603   :  { %v607_v4 = vmul.f32 %v692_v48, %v604_v51 }
 0x604   :  { %v598_v54 = vsub.f32 1.5, %v597_v53 }
 0x605   :  { %v610_v55 = vadd.f32 %v693_v52, %v607_v4 }
 0x606   :  { %v599_v56 = vmul.f32 %v715_v45, %v598_v54 }
 0x607   :  { %612 = vst.msk [vmem:[#allocation8] sm:$0xff] %vm103_vm0, %v610_v55 }
 0x608   :  { %v603_v57 = vsel %vm602_vm7, %v715_v45, %v599_v56 }
 0x609   :  { %v605_v58 = vmul.f32 %v603_v57, %v571_v31 }
 0x60b   :  { %v608_v59 = vmul.f32 %v692_v48, %v605_v58 }
 0x60d   :  { %v611_v60 = vadd.f32 %v693_v52, %v608_v59 }
 0x60f   :  { %613 = vst.msk [vmem:[#allocation8 + $0x8] sm:$0xff] %vm103_vm0, %v611_v60 }
 0x610   :  { %626 = dma.vmem_to_hbm [thread:$0]  %s619_s30, 256, %s621_s6, [#allocation4], %s819_s20, %s819_s20, %s820_s21  }
 0x611   :  { %816 = dma.done.wait [#allocation4], 256  }
 0x612   :  { %817 = vsyncadd [#allocation4], 4294967040 }
 0x613   :  { %631 = vsyncpa [#allocation3], 1 }
 0x614   :  { %632 = vsyncpa [#allocation6], 1 }
 0x615   :  { %633 = vsyncpa [#allocation4], 1 }

</bundles_post_ra>
